<compile_context>
chip_gen: v6e
topology: v6e:2x2x1
jax: 0.10.0
libtpu: 0.0.40
codegen_flags: <defaults>
</compile_context>

<pallas_src>
import numpy as np
import jax
import jax.numpy as jnp
from jax.experimental import pallas as pl
from jax.experimental.pallas import tpu as pltpu


# --------------------------------------------------------------------------- #
# Kernel
# --------------------------------------------------------------------------- #
def _hdc_kernel(x_ref, fwdw_ref, mcsw_ref, out_ref):
    """Fused cosine-similarity recall + circular-convolution bind.

    x_ref    : (TB, D)   raw input hypervectors (batch tile)
    fwdw_ref : (D, 2D)   [C | S] real-DFT matrices, C[n,k]=cos(2*pi*n*k/D), S=sin
    mcsw_ref : (D, 2D)   [MC | MS] = mem_n^T @ [C | S] / D  (memory + 1/D folded)
    out_ref  : (TB, D)   bound output
    """
    x = x_ref[...]
    d = x.shape[-1]

    # Query-side normalization only (memory side is folded into MCS); rsqrt is
    # an EUP op, off the MXU critical path.  Zero (padded) rows stay finite.
    inv_xn = jax.lax.rsqrt(
        jnp.maximum(jnp.sum(x * x, axis=-1, keepdims=True), 1e-16))

    # One (TB,D)x(D,2D) matmul each for the input spectrum and the (already
    # 1/D-scaled) similarity spectrum.
    xcs = jnp.dot(x, fwdw_ref[...], preferred_element_type=jnp.float32)
    scs = jnp.dot(x * inv_xn, mcsw_ref[...], preferred_element_type=jnp.float32)
    xc, xs = xcs[:, :d], xcs[:, d:]          # Re(DFT x), -Im(DFT x)
    sc, ss = scs[:, :d], scs[:, d:]          # Re(DFT sim)/D, -Im(DFT sim)/D

    pr = xc * sc - xs * ss                   # Re(X * Sim)/D
    qi = xc * ss + xs * sc                   # -Im(X * Sim)/D

    # Inverse real DFT, reusing the C and S halves of the resident FWD weights
    # (static, lane-aligned slices of the VMEM block).
    out = (jnp.dot(pr, fwdw_ref[:, :d], preferred_element_type=jnp.float32)
           + jnp.dot(qi, fwdw_ref[:, d:], preferred_element_type=jnp.float32))
    out_ref[...] = out.astype(out_ref.dtype)


# --------------------------------------------------------------------------- #
# One-time weight preparation (hoisted out of the per-call kernel)
# --------------------------------------------------------------------------- #
def prepare_memory(symbolic_memory):
    """Row-normalize the symbolic memory, fold it (and the 1/D of the inverse
    DFT) into the DFT matrices, and concatenate the forward weights along N."""
    s, d = symbolic_memory.shape
    assert s == d, "torch forward requires num_symbols == dim for the FFT bind"
    assert d % 2 == 0, "irfft(rfft*rfft) == circular convolution only for even D"

    # Host-side int64 modular arithmetic avoids int32 overflow of n*k at large D.
    n = np.arange(d, dtype=np.int64)
    kn = (n[:, None] * n[None, :]) % d
    theta = (2.0 * np.pi / d) * kn.astype(np.float64)
    dft_c = jnp.asarray(np.cos(theta), dtype=jnp.float32)        # (D, D), symmetric
    dft_s = jnp.asarray(np.sin(theta), dtype=jnp.float32)        # (D, D), symmetric

    mem = jnp.asarray(symbolic_memory, dtype=jnp.float32)
    inv_norm = jax.lax.rsqrt(
        jnp.maximum(jnp.sum(mem * mem, axis=-1, keepdims=True), 1e-16))
    mem_tn = (mem * inv_norm).T                                  # (D, S)

    inv_d = jnp.float32(1.0 / d)
    mc = (mem_tn @ dft_c) * inv_d
    ms = (mem_tn @ dft_s) * inv_d

    fwd_w = jnp.concatenate([dft_c, dft_s], axis=1)              # (D, 2D)
    mcs_w = jnp.concatenate([mc, ms], axis=1)                    # (D, 2D)
    return fwd_w, mcs_w


# --------------------------------------------------------------------------- #
# Tiling / VMEM policy (generation-aware, computed at trace time)
# --------------------------------------------------------------------------- #
def _round_up(x, m):
    return ((x + m - 1) // m) * m


def _device_kind():
    try:
        return jax.devices()[0].device_kind.lower()
    except Exception:
        return ""


def _choose_tile_b(bp, kind):
    # v5e MXU is 128 tall; v6e / v7x are 256.
    max_tile = 128 if ("v5 lite" in kind or "v5e" in kind) else 256
    tile = min(bp, max_tile)
    # v7x has two TensorCores: keep >= 2 grid steps so the "parallel" batch
    # axis can actually shard across them.
    if "7" in kind and bp > 8 and pl.cdiv(bp, tile) < 2:
        tile = max(8, _round_up(pl.cdiv(bp, 2), 8))
    return tile


def _vmem_limit_bytes(d, tile_b, kind):
    cap = (56 << 20) if "7" in kind else (100 << 20)   # v7x: 64 MiB physical VMEM
    weights = 2 * (d * 2 * d) * 4          # FWD + MCS, single-buffered
    io = 2 * 2 * (tile_b * d * 4)          # double-buffered input + output tiles
    interm = 8 * tile_b * d * 4            # xc/xs/sc/ss/pr/qi working-set headroom
    need = weights + io + interm + (4 << 20)
    return int(min(cap, max(need, 32 << 20)))


# --------------------------------------------------------------------------- #
# pallas_call wrapper
# --------------------------------------------------------------------------- #
def _make_forward(single_buffer_weights):
    weight_kwargs = (
        {"pipeline_mode": pl.Buffered(1)} if single_buffer_weights else {})

    @jax.jit
    def forward(x, fwd_w, mcs_w):
        b, d = x.shape
        bp = _round_up(max(b, 1), 8)
        if bp != b:  # tiny in-jit pad to a whole number of sublane rows
            x = jnp.pad(x, ((0, bp - b), (0, 0)))

        kind = _device_kind()
        tile_b = _choose_tile_b(bp, kind)
        grid = (pl.cdiv(bp, tile_b),)

        out = pl.pallas_call(
            _hdc_kernel,
            out_shape=jax.ShapeDtypeStruct((bp, d), jnp.float32),
            grid=grid,
            in_specs=[
                pl.BlockSpec((tile_b, d), lambda i: (i, 0)),        # batch tile
                pl.BlockSpec((d, 2 * d), lambda i: (0, 0), **weight_kwargs),
                pl.BlockSpec((d, 2 * d), lambda i: (0, 0), **weight_kwargs),
            ],
            out_specs=pl.BlockSpec((tile_b, d), lambda i: (i, 0)),
            compiler_params=pltpu.CompilerParams(
                dimension_semantics=("parallel",),  # megacore split on v7x
                vmem_limit_bytes=_vmem_limit_bytes(d, tile_b, kind),
            ),
        )(x, fwd_w, mcs_w)
        return out[:b]

    return forward


_FORWARD_CACHE = {"fn": None}


def hyperdimensional_transformer_forward(input_hv, fwd_w, mcs_w):
    """Accepts a single (D,) hypervector (module signature) or a (B, D) batch."""
    single = input_hv.ndim == 1
    x = (input_hv[None, :] if single else input_hv).astype(jnp.float32)

    fn = _FORWARD_CACHE["fn"]
    if fn is None:
        try:
            fn = _make_forward(True)
            out = jax.block_until_ready(fn(x, fwd_w, mcs_w))
            _FORWARD_CACHE["fn"] = fn
            return out[0] if single else out
        except Exception:
            # TODO(synk): pl.Buffered(1) not accepted by this JAX build; fall
            # back to default double-buffered weight blocks.
            fn = _make_forward(False)
            _FORWARD_CACHE["fn"] = fn

    out = fn(x, fwd_w, mcs_w)
    return out[0] if single else out


# --------------------------------------------------------------------------- #
# Self-test
# --------------------------------------------------------------------------- #
if __name__ == "__main__":
    # Small, deterministic setup consistent with the module:
    #   dim = num_symbols = 128 (must match for the forward's FFT bind),
    #   batch of 16 input hypervectors to exercise batching + the grid.
    dim = 128
    num_symbols = 128
    batch = 16

    key = jax.random.PRNGKey(0)
    k_mem, k_in = jax.random.split(key)
    symbolic_memory = jax.random.normal(k_mem, (num_symbols, dim), dtype=jnp.float32)
    input_hv = jax.random.normal(k_in, (batch, dim), dtype=jnp.float32)

    fwd_w, mcs_w = prepare_memory(symbolic_memory)
    bound = hyperdimensional_transformer_forward(input_hv, fwd_w, mcs_w)
    bound = jax.block_until_ready(bound)

    # Pure-JAX reference (mirrors the torch forward, batched over rows).
    xn = input_hv / jnp.linalg.norm(input_hv, axis=-1, keepdims=True)
    mn = symbolic_memory / jnp.linalg.norm(symbolic_memory, axis=-1, keepdims=True)
    sim_ref = xn @ mn.T                                               # (B, S)
    bound_ref = jnp.fft.irfft(
        jnp.fft.rfft(sim_ref, axis=-1) * jnp.fft.rfft(input_hv, axis=-1), axis=-1)

    assert bound.shape == (batch, dim)
    assert np.allclose(np.asarray(bound), np.asarray(bound_ref), rtol=1e-3, atol=1e-3)

    # Single-vector path (the module's actual forward signature).
    b1 = hyperdimensional_transformer_forward(input_hv[0], fwd_w, mcs_w)
    b1 = jax.block_until_ready(b1)
    assert b1.shape == (dim,)
    assert np.allclose(np.asarray(b1), np.asarray(bound_ref[0]), rtol=1e-3, atol=1e-3)

    print("KERNEL_OK")
</pallas_src>

<mosaic_0001>
module attributes {stable_mosaic.version = 11 : i64} {
  func.func @_hdc_kernel(%arg0: i32, %arg1: memref<16x128xf32, #tpu.memory_space<vmem>>, %arg2: memref<128x256xf32, #tpu.memory_space<vmem>>, %arg3: memref<128x256xf32, #tpu.memory_space<vmem>>, %arg4: memref<16x128xf32, #tpu.memory_space<vmem>>) attributes {dimension_semantics = [#tpu.dimension_semantics<parallel>], iteration_bounds = array<i64: 1>, scalar_prefetch = 0 : i64, scratch_operands = 0 : i64, tpu.core_type = #tpu.core_type<tc>, window_params = [{transform_indices = @transform_0, window_bounds = array<i64: 16, 128>}, {pipeline_mode = #tpu.pipeline_mode<synchronous>, transform_indices = @transform_1, window_bounds = array<i64: 128, 256>}, {pipeline_mode = #tpu.pipeline_mode<synchronous>, transform_indices = @transform_2, window_bounds = array<i64: 128, 256>}, {transform_indices = @transform_3, window_bounds = array<i64: 16, 128>}]} {
    %c0 = arith.constant 0 : index
    %c0_0 = arith.constant 0 : index
    %0 = vector.load %arg1[%c0, %c0_0] : memref<16x128xf32, #tpu.memory_space<vmem>>, vector<16x128xf32>
    %1 = arith.mulf %0, %0 : vector<16x128xf32>
    %cst = arith.constant dense<0.000000e+00> : vector<16xf32>
    %2 = vector.multi_reduction <add>, %1, %cst [1] : vector<16x128xf32> to vector<16xf32>
    %3 = vector.shape_cast %2 : vector<16xf32> to vector<16x1xf32>
    %cst_1 = arith.constant 1.000000e-16 : f32
    %4 = vector.broadcast %cst_1 : f32 to vector<16x1xf32>
    %5 = arith.maximumf %3, %4 : vector<16x1xf32>
    %6 = math.rsqrt %5 : vector<16x1xf32>
    %c0_2 = arith.constant 0 : index
    %c0_3 = arith.constant 0 : index
    %7 = vector.load %arg2[%c0_2, %c0_3] : memref<128x256xf32, #tpu.memory_space<vmem>>, vector<128x256xf32>
    %cst_4 = arith.constant dense<0.000000e+00> : vector<16x256xf32>
    %8 = tpu.matmul %0, %7, %cst_4 {dimension_numbers = #tpu.dot_dimension_numbers<[1], [0], [0], [1], [0, 0, 1, 1], [], []>} : vector<16x128xf32>, vector<128x256xf32>, vector<16x256xf32> -> vector<16x256xf32>
    %9 = vector.broadcast %6 : vector<16x1xf32> to vector<16x128xf32>
    %10 = arith.mulf %0, %9 : vector<16x128xf32>
    %c0_5 = arith.constant 0 : index
    %c0_6 = arith.constant 0 : index
    %11 = vector.load %arg3[%c0_5, %c0_6] : memref<128x256xf32, #tpu.memory_space<vmem>>, vector<128x256xf32>
    %cst_7 = arith.constant dense<0.000000e+00> : vector<16x256xf32>
    %12 = tpu.matmul %10, %11, %cst_7 {dimension_numbers = #tpu.dot_dimension_numbers<[1], [0], [0], [1], [0, 0, 1, 1], [], []>} : vector<16x128xf32>, vector<128x256xf32>, vector<16x256xf32> -> vector<16x256xf32>
    %13 = vector.extract_strided_slice %8 {offsets = [0, 0], sizes = [16, 128], strides = [1, 1]} : vector<16x256xf32> to vector<16x128xf32>
    %14 = vector.extract_strided_slice %8 {offsets = [0, 128], sizes = [16, 128], strides = [1, 1]} : vector<16x256xf32> to vector<16x128xf32>
    %15 = vector.extract_strided_slice %12 {offsets = [0, 0], sizes = [16, 128], strides = [1, 1]} : vector<16x256xf32> to vector<16x128xf32>
    %16 = vector.extract_strided_slice %12 {offsets = [0, 128], sizes = [16, 128], strides = [1, 1]} : vector<16x256xf32> to vector<16x128xf32>
    %17 = arith.mulf %13, %15 : vector<16x128xf32>
    %18 = arith.mulf %14, %16 : vector<16x128xf32>
    %19 = arith.subf %17, %18 : vector<16x128xf32>
    %20 = arith.mulf %13, %16 : vector<16x128xf32>
    %21 = arith.mulf %14, %15 : vector<16x128xf32>
    %22 = arith.addf %20, %21 : vector<16x128xf32>
    %c0_8 = arith.constant 0 : index
    %c0_9 = arith.constant 0 : index
    %23 = vector.load %arg2[%c0_8, %c0_9] : memref<128x256xf32, #tpu.memory_space<vmem>>, vector<128x128xf32>
    %cst_10 = arith.constant dense<0.000000e+00> : vector<16x128xf32>
    %24 = tpu.matmul %19, %23, %cst_10 {dimension_numbers = #tpu.dot_dimension_numbers<[1], [0], [0], [1], [0, 0, 1, 1], [], []>} : vector<16x128xf32>, vector<128x128xf32>, vector<16x128xf32> -> vector<16x128xf32>
    %c0_11 = arith.constant 0 : index
    %c128 = arith.constant 128 : index
    %25 = vector.load %arg2[%c0_11, %c128] : memref<128x256xf32, #tpu.memory_space<vmem>>, vector<128x128xf32>
    %cst_12 = arith.constant dense<0.000000e+00> : vector<16x128xf32>
    %26 = tpu.matmul %22, %25, %cst_12 {dimension_numbers = #tpu.dot_dimension_numbers<[1], [0], [0], [1], [0, 0, 1, 1], [], []>} : vector<16x128xf32>, vector<128x128xf32>, vector<16x128xf32> -> vector<16x128xf32>
    %27 = arith.addf %24, %26 : vector<16x128xf32>
    %c0_13 = arith.constant 0 : index
    %c0_14 = arith.constant 0 : index
    %28 = vector.load %arg4[%c0_13, %c0_14] : memref<16x128xf32, #tpu.memory_space<vmem>>, vector<16x128xf32>
    tpu.vector_store %arg4[%c0_13, %c0_14], %27 {strides = array<i32>} : memref<16x128xf32, #tpu.memory_space<vmem>>, vector<16x128xf32>,
    return
  }
  func.func @transform_0(%arg0: i32) -> (i32, i32) {
    %c0_i32 = arith.constant 0 : i32
    %c0_i32_0 = arith.constant 0 : i32
    return %arg0, %c0_i32 : i32, i32
  }
  func.func @transform_1(%arg0: i32) -> (i32, i32) {
    %c0_i32 = arith.constant 0 : i32
    %c0_i32_0 = arith.constant 0 : i32
    %c0_i32_1 = arith.constant 0 : i32
    return %c0_i32, %c0_i32_0 : i32, i32
  }
  func.func @transform_2(%arg0: i32) -> (i32, i32) {
    %c0_i32 = arith.constant 0 : i32
    %c0_i32_0 = arith.constant 0 : i32
    %c0_i32_1 = arith.constant 0 : i32
    return %c0_i32, %c0_i32_0 : i32, i32
  }
  func.func @transform_3(%arg0: i32) -> (i32, i32) {
    %c0_i32 = arith.constant 0 : i32
    %c0_i32_0 = arith.constant 0 : i32
    return %arg0, %c0_i32 : i32, i32
  }
}

module attributes {stable_mosaic.version = 11 : i64} {
  func.func @_hdc_kernel(%arg0: i32, %arg1: memref<16x128xf32, #tpu.memory_space<vmem>>, %arg2: memref<128x256xf32, #tpu.memory_space<vmem>>, %arg3: memref<128x256xf32, #tpu.memory_space<vmem>>, %arg4: memref<16x128xf32, #tpu.memory_space<vmem>>) attributes {dimension_semantics = [#tpu.dimension_semantics<parallel>], iteration_bounds = array<i64: 1>, scalar_prefetch = 0 : i64, scratch_operands = 0 : i64, tpu.core_type = #tpu.core_type<tc>, window_params = [{transform_indices = @transform_0, window_bounds = array<i64: 16, 128>}, {pipeline_mode = #tpu.pipeline_mode<synchronous>, transform_indices = @transform_1, window_bounds = array<i64: 128, 256>}, {pipeline_mode = #tpu.pipeline_mode<synchronous>, transform_indices = @transform_2, window_bounds = array<i64: 128, 256>}, {transform_indices = @transform_3, window_bounds = array<i64: 16, 128>}]} {
    %c0 = arith.constant 0 : index
    %c0_0 = arith.constant 0 : index
    %0 = vector.load %arg1[%c0, %c0_0] : memref<16x128xf32, #tpu.memory_space<vmem>>, vector<16x128xf32>
    %1 = arith.mulf %0, %0 : vector<16x128xf32>
    %cst = arith.constant dense<0.000000e+00> : vector<16xf32>
    %2 = vector.multi_reduction <add>, %1, %cst [1] : vector<16x128xf32> to vector<16xf32>
    %3 = vector.shape_cast %2 : vector<16xf32> to vector<16x1xf32>
    %cst_1 = arith.constant 1.000000e-16 : f32
    %4 = vector.broadcast %cst_1 : f32 to vector<16x1xf32>
    %5 = arith.maximumf %3, %4 : vector<16x1xf32>
    %6 = math.rsqrt %5 : vector<16x1xf32>
    %c0_2 = arith.constant 0 : index
    %c0_3 = arith.constant 0 : index
    %7 = vector.load %arg2[%c0_2, %c0_3] : memref<128x256xf32, #tpu.memory_space<vmem>>, vector<128x256xf32>
    %cst_4 = arith.constant dense<0.000000e+00> : vector<16x256xf32>
    %8 = tpu.matmul %0, %7, %cst_4 {dimension_numbers = #tpu.dot_dimension_numbers<[1], [0], [0], [1], [0, 0, 1, 1], [], []>} : vector<16x128xf32>, vector<128x256xf32>, vector<16x256xf32> -> vector<16x256xf32>
    %9 = vector.broadcast %6 : vector<16x1xf32> to vector<16x128xf32>
    %10 = arith.mulf %0, %9 : vector<16x128xf32>
    %c0_5 = arith.constant 0 : index
    %c0_6 = arith.constant 0 : index
    %11 = vector.load %arg3[%c0_5, %c0_6] : memref<128x256xf32, #tpu.memory_space<vmem>>, vector<128x256xf32>
    %cst_7 = arith.constant dense<0.000000e+00> : vector<16x256xf32>
    %12 = tpu.matmul %10, %11, %cst_7 {dimension_numbers = #tpu.dot_dimension_numbers<[1], [0], [0], [1], [0, 0, 1, 1], [], []>} : vector<16x128xf32>, vector<128x256xf32>, vector<16x256xf32> -> vector<16x256xf32>
    %13 = vector.extract_strided_slice %8 {offsets = [0, 0], sizes = [16, 128], strides = [1, 1]} : vector<16x256xf32> to vector<16x128xf32>
    %14 = vector.extract_strided_slice %8 {offsets = [0, 128], sizes = [16, 128], strides = [1, 1]} : vector<16x256xf32> to vector<16x128xf32>
    %15 = vector.extract_strided_slice %12 {offsets = [0, 0], sizes = [16, 128], strides = [1, 1]} : vector<16x256xf32> to vector<16x128xf32>
    %16 = vector.extract_strided_slice %12 {offsets = [0, 128], sizes = [16, 128], strides = [1, 1]} : vector<16x256xf32> to vector<16x128xf32>
    %17 = arith.mulf %13, %15 : vector<16x128xf32>
    %18 = arith.mulf %14, %16 : vector<16x128xf32>
    %19 = arith.subf %17, %18 : vector<16x128xf32>
    %20 = arith.mulf %13, %16 : vector<16x128xf32>
    %21 = arith.mulf %14, %15 : vector<16x128xf32>
    %22 = arith.addf %20, %21 : vector<16x128xf32>
    %c0_8 = arith.constant 0 : index
    %c0_9 = arith.constant 0 : index
    %23 = vector.load %arg2[%c0_8, %c0_9] : memref<128x256xf32, #tpu.memory_space<vmem>>, vector<128x128xf32>
    %cst_10 = arith.constant dense<0.000000e+00> : vector<16x128xf32>
    %24 = tpu.matmul %19, %23, %cst_10 {dimension_numbers = #tpu.dot_dimension_numbers<[1], [0], [0], [1], [0, 0, 1, 1], [], []>} : vector<16x128xf32>, vector<128x128xf32>, vector<16x128xf32> -> vector<16x128xf32>
    %c0_11 = arith.constant 0 : index
    %c128 = arith.constant 128 : index
    %25 = vector.load %arg2[%c0_11, %c128] : memref<128x256xf32, #tpu.memory_space<vmem>>, vector<128x128xf32>
    %cst_12 = arith.constant dense<0.000000e+00> : vector<16x128xf32>
    %26 = tpu.matmul %22, %25, %cst_12 {dimension_numbers = #tpu.dot_dimension_numbers<[1], [0], [0], [1], [0, 0, 1, 1], [], []>} : vector<16x128xf32>, vector<128x128xf32>, vector<16x128xf32> -> vector<16x128xf32>
    %27 = arith.addf %24, %26 : vector<16x128xf32>
    %c0_13 = arith.constant 0 : index
    %c0_14 = arith.constant 0 : index
    %28 = vector.load %arg4[%c0_13, %c0_14] : memref<16x128xf32, #tpu.memory_space<vmem>>, vector<16x128xf32>
    tpu.vector_store %arg4[%c0_13, %c0_14], %27 {strides = array<i32>} : memref<16x128xf32, #tpu.memory_space<vmem>>, vector<16x128xf32>,
    return
  }
  func.func @transform_0(%arg0: i32) -> (i32, i32) {
    %c0_i32 = arith.constant 0 : i32
    %c0_i32_0 = arith.constant 0 : i32
    return %arg0, %c0_i32 : i32, i32
  }
  func.func @transform_1(%arg0: i32) -> (i32, i32) {
    %c0_i32 = arith.constant 0 : i32
    %c0_i32_0 = arith.constant 0 : i32
    %c0_i32_1 = arith.constant 0 : i32
    return %c0_i32, %c0_i32_0 : i32, i32
  }
  func.func @transform_2(%arg0: i32) -> (i32, i32) {
    %c0_i32 = arith.constant 0 : i32
    %c0_i32_0 = arith.constant 0 : i32
    %c0_i32_1 = arith.constant 0 : i32
    return %c0_i32, %c0_i32_0 : i32, i32
  }
  func.func @transform_3(%arg0: i32) -> (i32, i32) {
    %c0_i32 = arith.constant 0 : i32
    %c0_i32_0 = arith.constant 0 : i32
    return %arg0, %c0_i32 : i32, i32
  }
}

</mosaic_0001>

<bundles_post_ra>
// kernel: forward.1
= control target key start
LH: loop header
LB: loop body
LE: loop exit
PB: predicated region body
PF: predicated region fallthrough
CT: control target
= control target key end

     0   :  { %8 = vsyncpa [#allocation3], 0  ;;  %s900_s0 = inlined_call_operand.hbm [shape: f32[16,128], index: 0, kind: input, shape index: {}]   ;;  %s901_s1 = inlined_call_operand.hbm [shape: f32[128,256], index: 1, kind: input, shape index: {}]   ;;  %s902_s2 = inlined_call_operand.hbm [shape: f32[128,256], index: 2, kind: input, shape index: {}]   ;;  %s903_s3 = inlined_call_operand.hbm [shape: f32[16,128], index: 3, kind: output, shape index: {}]  }
   0x1   :  { %9 = vsyncpa [#allocation6], 0 }
   0x2   :  { %10 = vsyncpa [#allocation4], 0  ;;  %s691_s12 = smov [#allocation5]  }
   0x3   :  { %s28_s13 = sshll.u32 %s691_s12, 4  ;;  %s29_s13 = int_to_ptr.vmem [resolvable:$true] %s28_s13 }
   0x4   :  { %s613_s14 = scalar_lea.vmem %s29_s13, 4096  ;;  %p618_p1 = scmp.lt.s32.totalorder %s29_s13, %s29_s13 }
   0x5   :  { %p614_p0 = scmp.ne.s32.totalorder %s29_s13, %s613_s14  ;;  %p619_p2 = scmp.lt.s32.totalorder %s613_s14, %s613_s14 }
   0x7   :  { %p620_p3 = por %p619_p2, %p618_p1 }
   0x9   :  { %p621_p4 = pnand %p620_p3, %p614_p0 }
   0xb   :  { %624 = shalt.err (!%p621_p4)
}
   0xc   :  { %s692_s15 = smov 256   ;;  %s693_s16 = smov 16  }
   0xd   :  { %34 = dma.hbm_to_vmem [thread:$0]  %s901_s1, 4096, %s29_s13, [#allocation6], %s692_s15, %s692_s15, %s693_s16  }
   0xe   :  { %s694_s19 = smov [#allocation2]  }
   0xf   :  { %s16_s20 = sshll.u32 %s694_s19, 4  ;;  %s17_s20 = int_to_ptr.vmem [resolvable:$true] %s16_s20 }
  0x10   :  { %s633_s21 = scalar_lea.vmem %s17_s20, 256  ;;  %p638_p6 = scmp.lt.s32.totalorder %s17_s20, %s17_s20 }
  0x11   :  { %p634_p5 = scmp.ne.s32.totalorder %s17_s20, %s633_s21  ;;  %p639_p7 = scmp.lt.s32.totalorder %s633_s21, %s633_s21 }
  0x13   :  { %p640_p8 = por %p639_p7, %p638_p6 }
  0x15   :  { %p641_p9 = pnand %p640_p8, %p634_p5 }
  0x17   :  { %644 = shalt.err (!%p641_p9)
}
  0x18   :  { %s695_s22 = smov 128   ;;  %s696_s23 = smov 8  }
  0x19   :  { %22 = dma.hbm_to_vmem [thread:$0]  %s900_s0, 256, %s17_s20, [#allocation3], %s695_s22, %s695_s22, %s696_s23  }
  0x1a   :  { %s697_s1 = smov [#allocation7]  }
  0x1b   :  { %s40_s26 = sshll.u32 %s697_s1, 4  ;;  %s41_s26 = int_to_ptr.vmem [resolvable:$true] %s40_s26 }
  0x1c   :  { %s653_s27 = scalar_lea.vmem %s41_s26, 4096  ;;  %p658_p11 = scmp.lt.s32.totalorder %s41_s26, %s41_s26 }
  0x1d   :  { %p654_p10 = scmp.ne.s32.totalorder %s41_s26, %s653_s27  ;;  %p659_p12 = scmp.lt.s32.totalorder %s653_s27, %s653_s27 }
  0x1f   :  { %p660_p13 = por %p659_p12, %p658_p11 }
  0x21   :  { %p661_p0 = pnand %p660_p13, %p654_p10 }
  0x23   :  { %664 = shalt.err (!%p661_p0)
}
  0x24   :  { %46 = dma.hbm_to_vmem [thread:$0]  %s902_s2, 4096, %s41_s26, [#allocation6], %s692_s15, %s692_s15, %s693_s16  }
  0x25   :  { %685 = dma.done.wait [#allocation3], 256  }
  0x26   :  { %686 = vsyncadd [#allocation3], 4294967040 }
  0x27   :  { %687 = dma.done.wait [#allocation6], 8192  }
  0x28   :  { %688 = vsyncadd [#allocation6], 4294959104  ;;  %v732_v0 = vld [vmem:[#allocation2] sm:$0xff]  ;;  %v734_v1 = vld [vmem:[#allocation2 + $0x8] sm:$0xff]  ;;  %s699_s0 = smov [#allocation8]  }
  0x29   :  { %v736_v2 = vld [vmem:[#allocation5 + $0xf8] sm:$0xff]  ;;  %v58_v3 = vmul.f32 %v732_v0, %v732_v0  ;;  %v741_v4 = vld [vmem:[#allocation5 + $0xf0] sm:$0xff]  ;;  %v743_v5 = vld [vmem:[#allocation5 + $0xe8] sm:$0xff]  ;;  %v59_v10 = vmul.f32 %v734_v1, %v734_v1  ;;  %s473_s2 = sshll.u32 %s699_s0, 4  ;;  %s474_s2 = int_to_ptr.vmem [resolvable:$true] %s473_s2 }
  0x2a   :  { %100 = vmatprep.subr.mxu0 %v736_v2  ;;  %v210_v6 = vld [vmem:[#allocation7 + $0xf8] sm:$0xff]  ;;  %v746_v7 = vld [vmem:[#allocation5 + $0xe0] sm:$0xff]  ;;  %v209_v8 = vld [vmem:[#allocation7 + $0xf0] sm:$0xff]  ;;  %s665_s30 = scalar_lea.vmem %s474_s2, 256  ;;  %p670_p2 = scmp.lt.s32.totalorder %s474_s2, %s474_s2 }
  0x2b   :  { %101 = vmatpush1.msra.mxu0 %v741_v4  ;;  %211 = vmatprep.subr.mxu1 %v210_v6  ;;  %v748_v9 = vld [vmem:[#allocation5 + $0xd8] sm:$0xff]  ;;  %v208_v11 = vld [vmem:[#allocation7 + $0xe8] sm:$0xff]  ;;  %v753_v12 = vld [vmem:[#allocation5 + $0xd0] sm:$0xff]  ;;  %p666_p1 = scmp.ne.s32.totalorder %s474_s2, %s665_s30  ;;  %p671_p3 = scmp.lt.s32.totalorder %s665_s30, %s665_s30 }
  0x2c   :  { %60 = vadd.xlane.f32.xlu0 %v58_v3  ;;  %102 = vmatprep.subr.mxu0 %v743_v5  ;;  %v207_v13 = vld [vmem:[#allocation7 + $0xe0] sm:$0xff]  ;;  %v756_v14 = vld [vmem:[#allocation5 + $0xc8] sm:$0xff]  ;;  %v206_v15 = vld [vmem:[#allocation7 + $0xd8] sm:$0xff] }
  0x2d   :  { %103 = vmatpush1.msra.mxu0 %v746_v7  ;;  %212 = vmatpush1.msra.mxu1 %v209_v8  ;;  %v759_v16 = vld [vmem:[#allocation5 + $0xc0] sm:$0xff]  ;;  %v205_v17 = vld [vmem:[#allocation7 + $0xd0] sm:$0xff]  ;;  %v762_v18 = vld [vmem:[#allocation5 + $0xb8] sm:$0xff]  ;;  %p672_p4 = por %p671_p3, %p670_p2 }
  0x2e   :  { %104 = vmatprep.subr.mxu0 %v748_v9  ;;  %213 = vmatprep.subr.mxu1 %v208_v11  ;;  %v204_v19 = vld [vmem:[#allocation7 + $0xc8] sm:$0xff]  ;;  %v765_v20 = vld [vmem:[#allocation5 + $0xb0] sm:$0xff]  ;;  %v203_v21 = vld [vmem:[#allocation7 + $0xc0] sm:$0xff]  ;;  %v698_v11 = vmov 0.0  }
  0x2f   :  { %105 = vmatpush1.msra.mxu0 %v753_v12  ;;  %214 = vmatpush1.msra.mxu1 %v207_v13  ;;  %v768_v22 = vld [vmem:[#allocation5 + $0xa8] sm:$0xff]  ;;  %v202_v23 = vld [vmem:[#allocation7 + $0xb8] sm:$0xff]  ;;  %v771_v24 = vld [vmem:[#allocation5 + $0xa0] sm:$0xff]  ;;  %p673_p5 = pnand %p672_p4, %p666_p1 }
  0x30   :  { %62 = vadd.xlane.f32.xlu0 %v59_v10  ;;  %106 = vmatprep.subr.mxu0 %v756_v14  ;;  %v201_v25 = vld [vmem:[#allocation7 + $0xb0] sm:$0xff]  ;;  %v774_v26 = vld [vmem:[#allocation5 + $0x98] sm:$0xff]  ;;  %v200_v27 = vld [vmem:[#allocation7 + $0xa8] sm:$0xff] }
  0x31   :  { %215 = vmatprep.subr.mxu1 %v206_v15  ;;  %107 = vmatpush1.msra.mxu0 %v759_v16  ;;  %v777_v28 = vld [vmem:[#allocation5 + $0x90] sm:$0xff]  ;;  %v199_v29 = vld [vmem:[#allocation7 + $0xa0] sm:$0xff]  ;;  %v780_v30 = vld [vmem:[#allocation5 + $0x88] sm:$0xff] }
  0x32   :  { %216 = vmatpush1.msra.mxu1 %v205_v17  ;;  %108 = vmatprep.subr.mxu0 %v762_v18  ;;  %v198_v31 = vld [vmem:[#allocation7 + $0x98] sm:$0xff]  ;;  %v783_v32 = vld [vmem:[#allocation5 + $0x80] sm:$0xff]  ;;  %v197_v33 = vld [vmem:[#allocation7 + $0x90] sm:$0xff] }
  0x33   :  { %217 = vmatprep.subr.mxu1 %v204_v19  ;;  %109 = vmatpush1.msra.mxu0 %v765_v20  ;;  %v786_v34 = vld [vmem:[#allocation5 + $0x78] sm:$0xff]  ;;  %v196_v35 = vld [vmem:[#allocation7 + $0x88] sm:$0xff]  ;;  %v789_v36 = vld [vmem:[#allocation5 + $0x70] sm:$0xff] }
  0x34   :  { %218 = vmatpush1.msra.mxu1 %v203_v21  ;;  %110 = vmatprep.subr.mxu0 %v768_v22  ;;  %v195_v37 = vld [vmem:[#allocation7 + $0x80] sm:$0xff]  ;;  %v792_v38 = vld [vmem:[#allocation5 + $0x68] sm:$0xff]  ;;  %v194_v39 = vld [vmem:[#allocation7 + $0x78] sm:$0xff] }
  0x35   :  { %219 = vmatprep.subr.mxu1 %v202_v23  ;;  %111 = vmatpush1.msra.mxu0 %v771_v24  ;;  %v795_v40 = vld [vmem:[#allocation5 + $0x60] sm:$0xff]  ;;  %v193_v41 = vld [vmem:[#allocation7 + $0x70] sm:$0xff]  ;;  %v798_v42 = vld [vmem:[#allocation5 + $0x58] sm:$0xff] }
  0x36   :  { %220 = vmatpush1.msra.mxu1 %v201_v25  ;;  %112 = vmatprep.subr.mxu0 %v774_v26  ;;  %v192_v43 = vld [vmem:[#allocation7 + $0x68] sm:$0xff]  ;;  %v801_v44 = vld [vmem:[#allocation5 + $0x50] sm:$0xff]  ;;  %v191_v45 = vld [vmem:[#allocation7 + $0x60] sm:$0xff] }
  0x37   :  { %221 = vmatprep.subr.mxu1 %v200_v27  ;;  %113 = vmatpush1.msra.mxu0 %v777_v28  ;;  %v804_v46 = vld [vmem:[#allocation5 + $0x48] sm:$0xff]  ;;  %v190_v47 = vld [vmem:[#allocation7 + $0x58] sm:$0xff]  ;;  %v807_v48 = vld [vmem:[#allocation5 + $0x40] sm:$0xff] }
  0x38   :  { %222 = vmatpush1.msra.mxu1 %v199_v29  ;;  %114 = vmatprep.subr.mxu0 %v780_v30  ;;  %v189_v49 = vld [vmem:[#allocation7 + $0x50] sm:$0xff]  ;;  %v810_v50 = vld [vmem:[#allocation5 + $0x38] sm:$0xff]  ;;  %v188_v51 = vld [vmem:[#allocation7 + $0x48] sm:$0xff] }
  0x39   :  { %223 = vmatprep.subr.mxu1 %v198_v31  ;;  %115 = vmatpush1.msra.mxu0 %v783_v32  ;;  %v813_v52 = vld [vmem:[#allocation5 + $0x30] sm:$0xff]  ;;  %v187_v53 = vld [vmem:[#allocation7 + $0x40] sm:$0xff]  ;;  %v816_v54 = vld [vmem:[#allocation5 + $0x28] sm:$0xff] }
  0x3a   :  { %224 = vmatpush1.msra.mxu1 %v197_v33  ;;  %116 = vmatprep.subr.mxu0 %v786_v34  ;;  %v186_v55 = vld [vmem:[#allocation7 + $0x38] sm:$0xff]  ;;  %v819_v56 = vld [vmem:[#allocation5 + $0x20] sm:$0xff]  ;;  %v185_v57 = vld [vmem:[#allocation7 + $0x30] sm:$0xff] }
  0x3b   :  { %225 = vmatprep.subr.mxu1 %v196_v35  ;;  %117 = vmatpush1.msra.mxu0 %v789_v36  ;;  %v71_v58 = vld [vmem:[#allocation5 + $0x18] sm:$0xff]  ;;  %v184_v59 = vld [vmem:[#allocation7 + $0x28] sm:$0xff]  ;;  %v823_v60 = vld [vmem:[#allocation5 + $0x10] sm:$0xff] }
  0x3c   :  { %226 = vmatpush1.msra.mxu1 %v195_v37  ;;  %118 = vmatprep.subr.mxu0 %v792_v38  ;;  %v183_v61 = vld [vmem:[#allocation7 + $0x20] sm:$0xff]  ;;  %v69_v62 = vld [vmem:[#allocation5 + $0x8] sm:$0xff]  ;;  %v182_v63 = vld [vmem:[#allocation7 + $0x18] sm:$0xff] }
  0x3d   :  { %227 = vmatprep.subr.mxu1 %v194_v39  ;;  %119 = vmatpush1.msra.mxu0 %v795_v40  ;;  %v826_v3 = vld [vmem:[#allocation5] sm:$0xff]  ;;  %v181_v6 = vld [vmem:[#allocation7 + $0x10] sm:$0xff]  ;;  %v180_v8 = vld [vmem:[#allocation7 + $0x8] sm:$0xff] }
  0x3e   :  { %228 = vmatpush1.msra.mxu1 %v193_v41  ;;  %120 = vmatprep.subr.mxu0 %v798_v42  ;;  %v179_v10 = vld [vmem:[#allocation7] sm:$0xff] }
  0x3f   :  { %229 = vmatprep.subr.mxu1 %v192_v43  ;;  %121 = vmatpush1.msra.mxu0 %v801_v44 }
  0x40   :  { %230 = vmatpush1.msra.mxu1 %v191_v45  ;;  %122 = vmatprep.subr.mxu0 %v804_v46 }
  0x41   :  { %231 = vmatprep.subr.mxu1 %v190_v47  ;;  %123 = vmatpush1.msra.mxu0 %v807_v48 }
  0x42   :  { %232 = vmatpush1.msra.mxu1 %v189_v49  ;;  %124 = vmatprep.subr.mxu0 %v810_v50 }
  0x43   :  { %233 = vmatprep.subr.mxu1 %v188_v51  ;;  %125 = vmatpush1.msra.mxu0 %v813_v52 }
  0x44   :  { %234 = vmatpush1.msra.mxu1 %v187_v53  ;;  %126 = vmatprep.subr.mxu0 %v816_v54 }
  0x45   :  { %235 = vmatprep.subr.mxu1 %v186_v55  ;;  %127 = vmatpush1.msra.mxu0 %v819_v56 }
  0x46   :  { %236 = vmatpush1.msra.mxu1 %v185_v57  ;;  %128 = vmatprep.subr.mxu0 %v71_v58 }
  0x47   :  { %237 = vmatprep.subr.mxu1 %v184_v59  ;;  %129 = vmatpush1.msra.mxu0 %v823_v60 }
  0x48   :  { %238 = vmatpush1.msra.mxu1 %v183_v61  ;;  %130 = vmatprep.subr.mxu0 %v69_v62 }
  0x49   :  { %239 = vmatprep.subr.mxu1 %v182_v63  ;;  %131 = vmatpush1.msra.mxu0 %v826_v3 }
  0x4a   :  { %164 = vmatprep.mubr.f32.mxu0 %v698_v11  ;;  %240 = vmatpush1.msra.mxu1 %v181_v6 }
  0x4b   :  { %165 = vmatmul.mubr.f32.vlgmr.msra.gmra.mxu0 %v732_v0  ;;  %241 = vmatprep.subr.mxu1 %v180_v8 }
  0x4c   :  { %242 = vmatpush1.msra.mxu1 %v179_v10  ;;  %275 = vmatprep.mubr.f32.mxu1 %v698_v11 }
  0x4d   :  { %170 = vmatprep.mubr.f32.mxu0 %v698_v11  ;;  %522 = vmatprep.subr.mxu0 %v736_v2 }
  0x4e   :  { %557 = vmatprep.subr.mxu1 %v741_v4  ;;  %523 = vmatpush3.msra.mxu0 %v736_v2 }
  0x4f   :  { %171 = vmatmul.mubr.f32.gmra.mxu0 %v734_v1  ;;  %524 = vmatprep.subr.mxu0 %v743_v5 }
  0x50   :  { %525 = vmatpush3.msra.mxu0 %v743_v5 }
  0x51   :  { %526 = vmatprep.subr.mxu0 %v748_v9 }
  0x52   :  { %527 = vmatpush3.msra.mxu0 %v748_v9 }
  0x53   :  { %528 = vmatprep.subr.mxu0 %v756_v14 }
  0x54   :  { %529 = vmatpush3.msra.mxu0 %v756_v14 }
  0x55   :  { %530 = vmatprep.subr.mxu0 %v762_v18 }
  0x56   :  { %531 = vmatpush3.msra.mxu0 %v762_v18 }
  0x57   :  { %532 = vmatprep.subr.mxu0 %v768_v22 }
  0x58   :  { %533 = vmatpush3.msra.mxu0 %v768_v22 }
  0x59   :  { %534 = vmatprep.subr.mxu0 %v774_v26 }
  0x5a   :  { %535 = vmatpush3.msra.mxu0 %v774_v26 }
  0x5b   :  { %536 = vmatprep.subr.mxu0 %v780_v30 }
  0x5c   :  { %537 = vmatpush3.msra.mxu0 %v780_v30 }
  0x5d   :  { %538 = vmatprep.subr.mxu0 %v786_v34 }
  0x5e   :  { %539 = vmatpush3.msra.mxu0 %v786_v34 }
  0x5f   :  { %540 = vmatprep.subr.mxu0 %v792_v38 }
  0x60   :  { %541 = vmatpush3.msra.mxu0 %v792_v38 }
  0x61   :  { %542 = vmatprep.subr.mxu0 %v798_v42 }
  0x62   :  { %543 = vmatpush3.msra.mxu0 %v798_v42 }
  0x63   :  { %544 = vmatprep.subr.mxu0 %v804_v46 }
  0x64   :  { %545 = vmatpush3.msra.mxu0 %v804_v46 }
  0x65   :  { %546 = vmatprep.subr.mxu0 %v810_v50 }
  0x66   :  { %547 = vmatpush3.msra.mxu0 %v810_v50 }
  0x67   :  { %548 = vmatprep.subr.mxu0 %v816_v54 }
  0x68   :  { %549 = vmatpush3.msra.mxu0 %v816_v54 }
  0x69   :  { %550 = vmatprep.subr.mxu0 %v71_v58 }
  0x6a   :  { %551 = vmatpush3.msra.mxu0 %v71_v58 }
  0x6b   :  { %552 = vmatprep.subr.mxu0 %v69_v62 }
  0x6c   :  { %553 = vmatpush3.msra.mxu0 %v69_v62 }
  0xb5   :  { %v61_v2 = vpop.xlane.xlu0 %60 }
  0xb6   :  { %v64_v5 = vmax.f32 %v61_v2, 1e-16 }
  0xb8   :  { %601 = vrsqrt.f32 %v64_v5 }
  0xb9   :  { %v63_v9 = vpop.xlane.xlu0 %62 }
  0xba   :  { %v65_v13 = vmax.f32 %v63_v9, 1e-16 }
  0xbc   :  { %603 = vrsqrt.f32 %v65_v13 }
  0xc5   :  { %v602_v14 = vpop.eup %601 }
  0xc6   :  { %v177_v15 = vmul.f32 %v602_v14, %v732_v0 }
  0xc8   :  { %276 = vmatmul.mubr.f32.vlgmr.msra.gmra.mxu1 %v177_v15 }
  0xc9   :  { %v604_v17 = vpop.eup %603  ;;  %281 = vmatprep.mubr.f32.mxu1 %v698_v11  ;;  %558 = vmatpush3.msra.mxu1 %v741_v4 }
  0xca   :  { %v178_v18 = vmul.f32 %v604_v17, %v734_v1  ;;  %559 = vmatprep.subr.mxu1 %v746_v7 }
  0xcb   :  { %560 = vmatpush3.msra.mxu1 %v746_v7 }
  0xcc   :  { %282 = vmatmul.mubr.f32.gmra.mxu1 %v178_v18  ;;  %561 = vmatprep.subr.mxu1 %v753_v12 }
  0xcd   :  { %562 = vmatpush3.msra.mxu1 %v753_v12 }
  0xce   :  { %563 = vmatprep.subr.mxu1 %v759_v16 }
  0xcf   :  { %564 = vmatpush3.msra.mxu1 %v759_v16 }
  0xd0   :  { %565 = vmatprep.subr.mxu1 %v765_v20 }
  0xd1   :  { %566 = vmatpush3.msra.mxu1 %v765_v20 }
  0xd2   :  { %567 = vmatprep.subr.mxu1 %v771_v24 }
  0xd3   :  { %568 = vmatpush3.msra.mxu1 %v771_v24 }
  0xd4   :  { %569 = vmatprep.subr.mxu1 %v777_v28 }
  0xd5   :  { %570 = vmatpush3.msra.mxu1 %v777_v28 }
  0xd6   :  { %571 = vmatprep.subr.mxu1 %v783_v32 }
  0xd7   :  { %572 = vmatpush3.msra.mxu1 %v783_v32 }
  0xd8   :  { %573 = vmatprep.subr.mxu1 %v789_v36 }
  0xd9   :  { %574 = vmatpush3.msra.mxu1 %v789_v36 }
  0xda   :  { %575 = vmatprep.subr.mxu1 %v795_v40 }
  0xdb   :  { %576 = vmatpush3.msra.mxu1 %v795_v40 }
  0xdc   :  { %577 = vmatprep.subr.mxu1 %v801_v44 }
  0xdd   :  { %578 = vmatpush3.msra.mxu1 %v801_v44 }
  0xde   :  { %579 = vmatprep.subr.mxu1 %v807_v48 }
  0xdf   :  { %580 = vmatpush3.msra.mxu1 %v807_v48 }
  0xe0   :  { %581 = vmatprep.subr.mxu1 %v813_v52 }
  0xe1   :  { %582 = vmatpush3.msra.mxu1 %v813_v52 }
  0xe2   :  { %583 = vmatprep.subr.mxu1 %v819_v56 }
  0xe3   :  { %584 = vmatpush3.msra.mxu1 %v819_v56 }
  0xe4   :  { %585 = vmatprep.subr.mxu1 %v823_v60 }
  0xe5   :  { %586 = vmatpush3.msra.mxu1 %v823_v60 }
  0xe6   :  { %587 = vmatprep.subr.mxu1 %v826_v3 }
  0xe7   :  { %588 = vmatpush3.msra.mxu1 %v826_v3 }
 0x10b   :  { %v166_v0 = vpop.f32.mrf.mxu0 }
 0x10d   :  { %v168_v1 = vpop.f32.mrf.mxu0 }
 0x10f   :  { %v172_v7 = vpop.f32.mrf.mxu0 }
 0x111   :  { %v174_v22 = vpop.f32.mrf.mxu0 }
 0x188   :  { %v277_v4 = vpop.f32.mrf.mxu1 }
 0x189   :  { %v288_v16 = vmul.f32 %v277_v4, %v166_v0  ;;  %v296_v19 = vmul.f32 %v277_v4, %v168_v1 }
 0x18a   :  { %v279_v12 = vpop.f32.mrf.mxu1 }
 0x18b   :  { %v290_v20 = vmul.f32 %v279_v12, %v168_v1  ;;  %v294_v21 = vmul.f32 %v279_v12, %v166_v0 }
 0x18c   :  { %v283_v23 = vpop.f32.mrf.mxu1 }
 0x18d   :  { %v292_v24 = vsub.f32 %v288_v16, %v290_v20  ;;  %v298_v25 = vadd.f32 %v296_v19, %v294_v21  ;;  %v289_v26 = vmul.f32 %v283_v23, %v172_v7  ;;  %v297_v28 = vmul.f32 %v283_v23, %v174_v22 }
 0x18e   :  { %v285_v27 = vpop.f32.mrf.mxu1 }
 0x18f   :  { %v291_v29 = vmul.f32 %v285_v27, %v174_v22  ;;  %v295_v30 = vmul.f32 %v285_v27, %v172_v7  ;;  %554 = vmatprep.mubr.f32.mxu0 %v298_v25  ;;  %589 = vmatprep.mubr.f32.mxu1 %v292_v24 }
 0x191   :  { %v293_v31 = vsub.f32 %v289_v26, %v291_v29  ;;  %v299_v32 = vadd.f32 %v297_v28, %v295_v30 }
 0x193   :  { %555 = vmatmul.mubr.f32.vlgmr.msra.gmra.mxu0 %v299_v32  ;;  %590 = vmatmul.mubr.f32.vlgmr.msra.gmra.mxu1 %v293_v31 }
 0x253   :  { %v556_v33 = vpop.f32.mrf.mxu0  ;;  %v591_v34 = vpop.f32.mrf.mxu1 }
 0x254   :  { %v463_v35 = vadd.f32 %v591_v34, %v556_v33 }
 0x255   :  { %v382_v36 = vpop.f32.mrf.mxu0  ;;  %v457_v37 = vpop.f32.mrf.mxu1 }
 0x256   :  { %467 = vst [vmem:[#allocation8 + $0x8] sm:$0xff] %v463_v35  ;;  %v458_v38 = vadd.f32 %v457_v37, %v382_v36 }
 0x258   :  { %466 = vst [vmem:[#allocation8] sm:$0xff] %v458_v38 }
 0x259   :  { %676 = shalt.err (!%p673_p5)
}
 0x25a   :  { %479 = dma.vmem_to_hbm [thread:$0]  %s474_s2, 256, %s903_s3, [#allocation4], %s695_s22, %s695_s22, %s696_s23  }
 0x25b   :  { %689 = dma.done.wait [#allocation4], 256  }
 0x25c   :  { %690 = vsyncadd [#allocation4], 4294967040 }
 0x25d   :  { %483 = vsyncpa [#allocation3], 1 }
 0x25e   :  { %484 = vsyncpa [#allocation6], 1 }
 0x25f   :  { %485 = vsyncpa [#allocation4], 1 }

// kernel: forward.1
= control target key start
LH: loop header
LB: loop body
LE: loop exit
PB: predicated region body
PF: predicated region fallthrough
CT: control target
= control target key end

     0   :  { %8 = vsyncpa [#allocation3], 0  ;;  %s900_s0 = inlined_call_operand.hbm [shape: f32[16,128], index: 0, kind: input, shape index: {}]   ;;  %s901_s1 = inlined_call_operand.hbm [shape: f32[128,256], index: 1, kind: input, shape index: {}]   ;;  %s902_s2 = inlined_call_operand.hbm [shape: f32[128,256], index: 2, kind: input, shape index: {}]   ;;  %s903_s3 = inlined_call_operand.hbm [shape: f32[16,128], index: 3, kind: output, shape index: {}]  }
   0x1   :  { %9 = vsyncpa [#allocation6], 0 }
   0x2   :  { %10 = vsyncpa [#allocation4], 0  ;;  %s691_s12 = smov [#allocation5]  }
   0x3   :  { %s28_s13 = sshll.u32 %s691_s12, 4  ;;  %s29_s13 = int_to_ptr.vmem [resolvable:$true] %s28_s13 }
   0x4   :  { %s613_s14 = scalar_lea.vmem %s29_s13, 4096  ;;  %p618_p1 = scmp.lt.s32.totalorder %s29_s13, %s29_s13 }
   0x5   :  { %p614_p0 = scmp.ne.s32.totalorder %s29_s13, %s613_s14  ;;  %p619_p2 = scmp.lt.s32.totalorder %s613_s14, %s613_s14 }
   0x7   :  { %p620_p3 = por %p619_p2, %p618_p1 }
   0x9   :  { %p621_p4 = pnand %p620_p3, %p614_p0 }
   0xb   :  { %624 = shalt.err (!%p621_p4)
}
   0xc   :  { %s692_s15 = smov 256   ;;  %s693_s16 = smov 16  }
   0xd   :  { %34 = dma.hbm_to_vmem [thread:$0]  %s901_s1, 4096, %s29_s13, [#allocation6], %s692_s15, %s692_s15, %s693_s16  }
   0xe   :  { %s694_s19 = smov [#allocation2]  }
   0xf   :  { %s16_s20 = sshll.u32 %s694_s19, 4  ;;  %s17_s20 = int_to_ptr.vmem [resolvable:$true] %s16_s20 }
  0x10   :  { %s633_s21 = scalar_lea.vmem %s17_s20, 256  ;;  %p638_p6 = scmp.lt.s32.totalorder %s17_s20, %s17_s20 }
  0x11   :  { %p634_p5 = scmp.ne.s32.totalorder %s17_s20, %s633_s21  ;;  %p639_p7 = scmp.lt.s32.totalorder %s633_s21, %s633_s21 }
  0x13   :  { %p640_p8 = por %p639_p7, %p638_p6 }
  0x15   :  { %p641_p9 = pnand %p640_p8, %p634_p5 }
  0x17   :  { %644 = shalt.err (!%p641_p9)
}
  0x18   :  { %s695_s22 = smov 128   ;;  %s696_s23 = smov 8  }
  0x19   :  { %22 = dma.hbm_to_vmem [thread:$0]  %s900_s0, 256, %s17_s20, [#allocation3], %s695_s22, %s695_s22, %s696_s23  }
  0x1a   :  { %s697_s1 = smov [#allocation7]  }
  0x1b   :  { %s40_s26 = sshll.u32 %s697_s1, 4  ;;  %s41_s26 = int_to_ptr.vmem [resolvable:$true] %s40_s26 }
  0x1c   :  { %s653_s27 = scalar_lea.vmem %s41_s26, 4096  ;;  %p658_p11 = scmp.lt.s32.totalorder %s41_s26, %s41_s26 }
  0x1d   :  { %p654_p10 = scmp.ne.s32.totalorder %s41_s26, %s653_s27  ;;  %p659_p12 = scmp.lt.s32.totalorder %s653_s27, %s653_s27 }
  0x1f   :  { %p660_p13 = por %p659_p12, %p658_p11 }
  0x21   :  { %p661_p0 = pnand %p660_p13, %p654_p10 }
  0x23   :  { %664 = shalt.err (!%p661_p0)
}
  0x24   :  { %46 = dma.hbm_to_vmem [thread:$0]  %s902_s2, 4096, %s41_s26, [#allocation6], %s692_s15, %s692_s15, %s693_s16  }
  0x25   :  { %685 = dma.done.wait [#allocation3], 256  }
  0x26   :  { %686 = vsyncadd [#allocation3], 4294967040 }
  0x27   :  { %687 = dma.done.wait [#allocation6], 8192  }
  0x28   :  { %688 = vsyncadd [#allocation6], 4294959104  ;;  %v732_v0 = vld [vmem:[#allocation2] sm:$0xff]  ;;  %v734_v1 = vld [vmem:[#allocation2 + $0x8] sm:$0xff]  ;;  %s699_s0 = smov [#allocation8]  }
  0x29   :  { %v736_v2 = vld [vmem:[#allocation5 + $0xf8] sm:$0xff]  ;;  %v58_v3 = vmul.f32 %v732_v0, %v732_v0  ;;  %v741_v4 = vld [vmem:[#allocation5 + $0xf0] sm:$0xff]  ;;  %v743_v5 = vld [vmem:[#allocation5 + $0xe8] sm:$0xff]  ;;  %v59_v10 = vmul.f32 %v734_v1, %v734_v1  ;;  %s473_s2 = sshll.u32 %s699_s0, 4  ;;  %s474_s2 = int_to_ptr.vmem [resolvable:$true] %s473_s2 }
  0x2a   :  { %100 = vmatprep.subr.mxu0 %v736_v2  ;;  %v210_v6 = vld [vmem:[#allocation7 + $0xf8] sm:$0xff]  ;;  %v746_v7 = vld [vmem:[#allocation5 + $0xe0] sm:$0xff]  ;;  %v209_v8 = vld [vmem:[#allocation7 + $0xf0] sm:$0xff]  ;;  %s665_s30 = scalar_lea.vmem %s474_s2, 256  ;;  %p670_p2 = scmp.lt.s32.totalorder %s474_s2, %s474_s2 }
  0x2b   :  { %101 = vmatpush1.msra.mxu0 %v741_v4  ;;  %211 = vmatprep.subr.mxu1 %v210_v6  ;;  %v748_v9 = vld [vmem:[#allocation5 + $0xd8] sm:$0xff]  ;;  %v208_v11 = vld [vmem:[#allocation7 + $0xe8] sm:$0xff]  ;;  %v753_v12 = vld [vmem:[#allocation5 + $0xd0] sm:$0xff]  ;;  %p666_p1 = scmp.ne.s32.totalorder %s474_s2, %s665_s30  ;;  %p671_p3 = scmp.lt.s32.totalorder %s665_s30, %s665_s30 }
  0x2c   :  { %60 = vadd.xlane.f32.xlu0 %v58_v3  ;;  %102 = vmatprep.subr.mxu0 %v743_v5  ;;  %v207_v13 = vld [vmem:[#allocation7 + $0xe0] sm:$0xff]  ;;  %v756_v14 = vld [vmem:[#allocation5 + $0xc8] sm:$0xff]  ;;  %v206_v15 = vld [vmem:[#allocation7 + $0xd8] sm:$0xff] }
  0x2d   :  { %103 = vmatpush1.msra.mxu0 %v746_v7  ;;  %212 = vmatpush1.msra.mxu1 %v209_v8  ;;  %v759_v16 = vld [vmem:[#allocation5 + $0xc0] sm:$0xff]  ;;  %v205_v17 = vld [vmem:[#allocation7 + $0xd0] sm:$0xff]  ;;  %v762_v18 = vld [vmem:[#allocation5 + $0xb8] sm:$0xff]  ;;  %p672_p4 = por %p671_p3, %p670_p2 }
  0x2e   :  { %104 = vmatprep.subr.mxu0 %v748_v9  ;;  %213 = vmatprep.subr.mxu1 %v208_v11  ;;  %v204_v19 = vld [vmem:[#allocation7 + $0xc8] sm:$0xff]  ;;  %v765_v20 = vld [vmem:[#allocation5 + $0xb0] sm:$0xff]  ;;  %v203_v21 = vld [vmem:[#allocation7 + $0xc0] sm:$0xff]  ;;  %v698_v11 = vmov 0.0  }
  0x2f   :  { %105 = vmatpush1.msra.mxu0 %v753_v12  ;;  %214 = vmatpush1.msra.mxu1 %v207_v13  ;;  %v768_v22 = vld [vmem:[#allocation5 + $0xa8] sm:$0xff]  ;;  %v202_v23 = vld [vmem:[#allocation7 + $0xb8] sm:$0xff]  ;;  %v771_v24 = vld [vmem:[#allocation5 + $0xa0] sm:$0xff]  ;;  %p673_p5 = pnand %p672_p4, %p666_p1 }
  0x30   :  { %62 = vadd.xlane.f32.xlu0 %v59_v10  ;;  %106 = vmatprep.subr.mxu0 %v756_v14  ;;  %v201_v25 = vld [vmem:[#allocation7 + $0xb0] sm:$0xff]  ;;  %v774_v26 = vld [vmem:[#allocation5 + $0x98] sm:$0xff]  ;;  %v200_v27 = vld [vmem:[#allocation7 + $0xa8] sm:$0xff] }
  0x31   :  { %215 = vmatprep.subr.mxu1 %v206_v15  ;;  %107 = vmatpush1.msra.mxu0 %v759_v16  ;;  %v777_v28 = vld [vmem:[#allocation5 + $0x90] sm:$0xff]  ;;  %v199_v29 = vld [vmem:[#allocation7 + $0xa0] sm:$0xff]  ;;  %v780_v30 = vld [vmem:[#allocation5 + $0x88] sm:$0xff] }
  0x32   :  { %216 = vmatpush1.msra.mxu1 %v205_v17  ;;  %108 = vmatprep.subr.mxu0 %v762_v18  ;;  %v198_v31 = vld [vmem:[#allocation7 + $0x98] sm:$0xff]  ;;  %v783_v32 = vld [vmem:[#allocation5 + $0x80] sm:$0xff]  ;;  %v197_v33 = vld [vmem:[#allocation7 + $0x90] sm:$0xff] }
  0x33   :  { %217 = vmatprep.subr.mxu1 %v204_v19  ;;  %109 = vmatpush1.msra.mxu0 %v765_v20  ;;  %v786_v34 = vld [vmem:[#allocation5 + $0x78] sm:$0xff]  ;;  %v196_v35 = vld [vmem:[#allocation7 + $0x88] sm:$0xff]  ;;  %v789_v36 = vld [vmem:[#allocation5 + $0x70] sm:$0xff] }
  0x34   :  { %218 = vmatpush1.msra.mxu1 %v203_v21  ;;  %110 = vmatprep.subr.mxu0 %v768_v22  ;;  %v195_v37 = vld [vmem:[#allocation7 + $0x80] sm:$0xff]  ;;  %v792_v38 = vld [vmem:[#allocation5 + $0x68] sm:$0xff]  ;;  %v194_v39 = vld [vmem:[#allocation7 + $0x78] sm:$0xff] }
  0x35   :  { %219 = vmatprep.subr.mxu1 %v202_v23  ;;  %111 = vmatpush1.msra.mxu0 %v771_v24  ;;  %v795_v40 = vld [vmem:[#allocation5 + $0x60] sm:$0xff]  ;;  %v193_v41 = vld [vmem:[#allocation7 + $0x70] sm:$0xff]  ;;  %v798_v42 = vld [vmem:[#allocation5 + $0x58] sm:$0xff] }
  0x36   :  { %220 = vmatpush1.msra.mxu1 %v201_v25  ;;  %112 = vmatprep.subr.mxu0 %v774_v26  ;;  %v192_v43 = vld [vmem:[#allocation7 + $0x68] sm:$0xff]  ;;  %v801_v44 = vld [vmem:[#allocation5 + $0x50] sm:$0xff]  ;;  %v191_v45 = vld [vmem:[#allocation7 + $0x60] sm:$0xff] }
  0x37   :  { %221 = vmatprep.subr.mxu1 %v200_v27  ;;  %113 = vmatpush1.msra.mxu0 %v777_v28  ;;  %v804_v46 = vld [vmem:[#allocation5 + $0x48] sm:$0xff]  ;;  %v190_v47 = vld [vmem:[#allocation7 + $0x58] sm:$0xff]  ;;  %v807_v48 = vld [vmem:[#allocation5 + $0x40] sm:$0xff] }
  0x38   :  { %222 = vmatpush1.msra.mxu1 %v199_v29  ;;  %114 = vmatprep.subr.mxu0 %v780_v30  ;;  %v189_v49 = vld [vmem:[#allocation7 + $0x50] sm:$0xff]  ;;  %v810_v50 = vld [vmem:[#allocation5 + $0x38] sm:$0xff]  ;;  %v188_v51 = vld [vmem:[#allocation7 + $0x48] sm:$0xff] }
  0x39   :  { %223 = vmatprep.subr.mxu1 %v198_v31  ;;  %115 = vmatpush1.msra.mxu0 %v783_v32  ;;  %v813_v52 = vld [vmem:[#allocation5 + $0x30] sm:$0xff]  ;;  %v187_v53 = vld [vmem:[#allocation7 + $0x40] sm:$0xff]  ;;  %v816_v54 = vld [vmem:[#allocation5 + $0x28] sm:$0xff] }
  0x3a   :  { %224 = vmatpush1.msra.mxu1 %v197_v33  ;;  %116 = vmatprep.subr.mxu0 %v786_v34  ;;  %v186_v55 = vld [vmem:[#allocation7 + $0x38] sm:$0xff]  ;;  %v819_v56 = vld [vmem:[#allocation5 + $0x20] sm:$0xff]  ;;  %v185_v57 = vld [vmem:[#allocation7 + $0x30] sm:$0xff] }
  0x3b   :  { %225 = vmatprep.subr.mxu1 %v196_v35  ;;  %117 = vmatpush1.msra.mxu0 %v789_v36  ;;  %v71_v58 = vld [vmem:[#allocation5 + $0x18] sm:$0xff]  ;;  %v184_v59 = vld [vmem:[#allocation7 + $0x28] sm:$0xff]  ;;  %v823_v60 = vld [vmem:[#allocation5 + $0x10] sm:$0xff] }
  0x3c   :  { %226 = vmatpush1.msra.mxu1 %v195_v37  ;;  %118 = vmatprep.subr.mxu0 %v792_v38  ;;  %v183_v61 = vld [vmem:[#allocation7 + $0x20] sm:$0xff]  ;;  %v69_v62 = vld [vmem:[#allocation5 + $0x8] sm:$0xff]  ;;  %v182_v63 = vld [vmem:[#allocation7 + $0x18] sm:$0xff] }
  0x3d   :  { %227 = vmatprep.subr.mxu1 %v194_v39  ;;  %119 = vmatpush1.msra.mxu0 %v795_v40  ;;  %v826_v3 = vld [vmem:[#allocation5] sm:$0xff]  ;;  %v181_v6 = vld [vmem:[#allocation7 + $0x10] sm:$0xff]  ;;  %v180_v8 = vld [vmem:[#allocation7 + $0x8] sm:$0xff] }
  0x3e   :  { %228 = vmatpush1.msra.mxu1 %v193_v41  ;;  %120 = vmatprep.subr.mxu0 %v798_v42  ;;  %v179_v10 = vld [vmem:[#allocation7] sm:$0xff] }
  0x3f   :  { %229 = vmatprep.subr.mxu1 %v192_v43  ;;  %121 = vmatpush1.msra.mxu0 %v801_v44 }
  0x40   :  { %230 = vmatpush1.msra.mxu1 %v191_v45  ;;  %122 = vmatprep.subr.mxu0 %v804_v46 }
  0x41   :  { %231 = vmatprep.subr.mxu1 %v190_v47  ;;  %123 = vmatpush1.msra.mxu0 %v807_v48 }
  0x42   :  { %232 = vmatpush1.msra.mxu1 %v189_v49  ;;  %124 = vmatprep.subr.mxu0 %v810_v50 }
  0x43   :  { %233 = vmatprep.subr.mxu1 %v188_v51  ;;  %125 = vmatpush1.msra.mxu0 %v813_v52 }
  0x44   :  { %234 = vmatpush1.msra.mxu1 %v187_v53  ;;  %126 = vmatprep.subr.mxu0 %v816_v54 }
  0x45   :  { %235 = vmatprep.subr.mxu1 %v186_v55  ;;  %127 = vmatpush1.msra.mxu0 %v819_v56 }
  0x46   :  { %236 = vmatpush1.msra.mxu1 %v185_v57  ;;  %128 = vmatprep.subr.mxu0 %v71_v58 }
  0x47   :  { %237 = vmatprep.subr.mxu1 %v184_v59  ;;  %129 = vmatpush1.msra.mxu0 %v823_v60 }
  0x48   :  { %238 = vmatpush1.msra.mxu1 %v183_v61  ;;  %130 = vmatprep.subr.mxu0 %v69_v62 }
  0x49   :  { %239 = vmatprep.subr.mxu1 %v182_v63  ;;  %131 = vmatpush1.msra.mxu0 %v826_v3 }
  0x4a   :  { %164 = vmatprep.mubr.f32.mxu0 %v698_v11  ;;  %240 = vmatpush1.msra.mxu1 %v181_v6 }
  0x4b   :  { %165 = vmatmul.mubr.f32.vlgmr.msra.gmra.mxu0 %v732_v0  ;;  %241 = vmatprep.subr.mxu1 %v180_v8 }
  0x4c   :  { %242 = vmatpush1.msra.mxu1 %v179_v10  ;;  %275 = vmatprep.mubr.f32.mxu1 %v698_v11 }
  0x4d   :  { %170 = vmatprep.mubr.f32.mxu0 %v698_v11  ;;  %522 = vmatprep.subr.mxu0 %v736_v2 }
  0x4e   :  { %557 = vmatprep.subr.mxu1 %v741_v4  ;;  %523 = vmatpush3.msra.mxu0 %v736_v2 }
  0x4f   :  { %171 = vmatmul.mubr.f32.gmra.mxu0 %v734_v1  ;;  %524 = vmatprep.subr.mxu0 %v743_v5 }
  0x50   :  { %525 = vmatpush3.msra.mxu0 %v743_v5 }
  0x51   :  { %526 = vmatprep.subr.mxu0 %v748_v9 }
  0x52   :  { %527 = vmatpush3.msra.mxu0 %v748_v9 }
  0x53   :  { %528 = vmatprep.subr.mxu0 %v756_v14 }
  0x54   :  { %529 = vmatpush3.msra.mxu0 %v756_v14 }
  0x55   :  { %530 = vmatprep.subr.mxu0 %v762_v18 }
  0x56   :  { %531 = vmatpush3.msra.mxu0 %v762_v18 }
  0x57   :  { %532 = vmatprep.subr.mxu0 %v768_v22 }
  0x58   :  { %533 = vmatpush3.msra.mxu0 %v768_v22 }
  0x59   :  { %534 = vmatprep.subr.mxu0 %v774_v26 }
  0x5a   :  { %535 = vmatpush3.msra.mxu0 %v774_v26 }
  0x5b   :  { %536 = vmatprep.subr.mxu0 %v780_v30 }
  0x5c   :  { %537 = vmatpush3.msra.mxu0 %v780_v30 }
  0x5d   :  { %538 = vmatprep.subr.mxu0 %v786_v34 }
  0x5e   :  { %539 = vmatpush3.msra.mxu0 %v786_v34 }
  0x5f   :  { %540 = vmatprep.subr.mxu0 %v792_v38 }
  0x60   :  { %541 = vmatpush3.msra.mxu0 %v792_v38 }
  0x61   :  { %542 = vmatprep.subr.mxu0 %v798_v42 }
  0x62   :  { %543 = vmatpush3.msra.mxu0 %v798_v42 }
  0x63   :  { %544 = vmatprep.subr.mxu0 %v804_v46 }
  0x64   :  { %545 = vmatpush3.msra.mxu0 %v804_v46 }
  0x65   :  { %546 = vmatprep.subr.mxu0 %v810_v50 }
  0x66   :  { %547 = vmatpush3.msra.mxu0 %v810_v50 }
  0x67   :  { %548 = vmatprep.subr.mxu0 %v816_v54 }
  0x68   :  { %549 = vmatpush3.msra.mxu0 %v816_v54 }
  0x69   :  { %550 = vmatprep.subr.mxu0 %v71_v58 }
  0x6a   :  { %551 = vmatpush3.msra.mxu0 %v71_v58 }
  0x6b   :  { %552 = vmatprep.subr.mxu0 %v69_v62 }
  0x6c   :  { %553 = vmatpush3.msra.mxu0 %v69_v62 }
  0xb5   :  { %v61_v2 = vpop.xlane.xlu0 %60 }
  0xb6   :  { %v64_v5 = vmax.f32 %v61_v2, 1e-16 }
  0xb8   :  { %601 = vrsqrt.f32 %v64_v5 }
  0xb9   :  { %v63_v9 = vpop.xlane.xlu0 %62 }
  0xba   :  { %v65_v13 = vmax.f32 %v63_v9, 1e-16 }
  0xbc   :  { %603 = vrsqrt.f32 %v65_v13 }
  0xc5   :  { %v602_v14 = vpop.eup %601 }
  0xc6   :  { %v177_v15 = vmul.f32 %v602_v14, %v732_v0 }
  0xc8   :  { %276 = vmatmul.mubr.f32.vlgmr.msra.gmra.mxu1 %v177_v15 }
  0xc9   :  { %v604_v17 = vpop.eup %603  ;;  %281 = vmatprep.mubr.f32.mxu1 %v698_v11  ;;  %558 = vmatpush3.msra.mxu1 %v741_v4 }
  0xca   :  { %v178_v18 = vmul.f32 %v604_v17, %v734_v1  ;;  %559 = vmatprep.subr.mxu1 %v746_v7 }
  0xcb   :  { %560 = vmatpush3.msra.mxu1 %v746_v7 }
  0xcc   :  { %282 = vmatmul.mubr.f32.gmra.mxu1 %v178_v18  ;;  %561 = vmatprep.subr.mxu1 %v753_v12 }
  0xcd   :  { %562 = vmatpush3.msra.mxu1 %v753_v12 }
  0xce   :  { %563 = vmatprep.subr.mxu1 %v759_v16 }
  0xcf   :  { %564 = vmatpush3.msra.mxu1 %v759_v16 }
  0xd0   :  { %565 = vmatprep.subr.mxu1 %v765_v20 }
  0xd1   :  { %566 = vmatpush3.msra.mxu1 %v765_v20 }
  0xd2   :  { %567 = vmatprep.subr.mxu1 %v771_v24 }
  0xd3   :  { %568 = vmatpush3.msra.mxu1 %v771_v24 }
  0xd4   :  { %569 = vmatprep.subr.mxu1 %v777_v28 }
  0xd5   :  { %570 = vmatpush3.msra.mxu1 %v777_v28 }
  0xd6   :  { %571 = vmatprep.subr.mxu1 %v783_v32 }
  0xd7   :  { %572 = vmatpush3.msra.mxu1 %v783_v32 }
  0xd8   :  { %573 = vmatprep.subr.mxu1 %v789_v36 }
  0xd9   :  { %574 = vmatpush3.msra.mxu1 %v789_v36 }
  0xda   :  { %575 = vmatprep.subr.mxu1 %v795_v40 }
  0xdb   :  { %576 = vmatpush3.msra.mxu1 %v795_v40 }
  0xdc   :  { %577 = vmatprep.subr.mxu1 %v801_v44 }
  0xdd   :  { %578 = vmatpush3.msra.mxu1 %v801_v44 }
  0xde   :  { %579 = vmatprep.subr.mxu1 %v807_v48 }
  0xdf   :  { %580 = vmatpush3.msra.mxu1 %v807_v48 }
  0xe0   :  { %581 = vmatprep.subr.mxu1 %v813_v52 }
  0xe1   :  { %582 = vmatpush3.msra.mxu1 %v813_v52 }
  0xe2   :  { %583 = vmatprep.subr.mxu1 %v819_v56 }
  0xe3   :  { %584 = vmatpush3.msra.mxu1 %v819_v56 }
  0xe4   :  { %585 = vmatprep.subr.mxu1 %v823_v60 }
  0xe5   :  { %586 = vmatpush3.msra.mxu1 %v823_v60 }
  0xe6   :  { %587 = vmatprep.subr.mxu1 %v826_v3 }
  0xe7   :  { %588 = vmatpush3.msra.mxu1 %v826_v3 }
 0x10b   :  { %v166_v0 = vpop.f32.mrf.mxu0 }
 0x10d   :  { %v168_v1 = vpop.f32.mrf.mxu0 }
 0x10f   :  { %v172_v7 = vpop.f32.mrf.mxu0 }
 0x111   :  { %v174_v22 = vpop.f32.mrf.mxu0 }
 0x188   :  { %v277_v4 = vpop.f32.mrf.mxu1 }
 0x189   :  { %v288_v16 = vmul.f32 %v277_v4, %v166_v0  ;;  %v296_v19 = vmul.f32 %v277_v4, %v168_v1 }
 0x18a   :  { %v279_v12 = vpop.f32.mrf.mxu1 }
 0x18b   :  { %v290_v20 = vmul.f32 %v279_v12, %v168_v1  ;;  %v294_v21 = vmul.f32 %v279_v12, %v166_v0 }
 0x18c   :  { %v283_v23 = vpop.f32.mrf.mxu1 }
 0x18d   :  { %v292_v24 = vsub.f32 %v288_v16, %v290_v20  ;;  %v298_v25 = vadd.f32 %v296_v19, %v294_v21  ;;  %v289_v26 = vmul.f32 %v283_v23, %v172_v7  ;;  %v297_v28 = vmul.f32 %v283_v23, %v174_v22 }
 0x18e   :  { %v285_v27 = vpop.f32.mrf.mxu1 }
 0x18f   :  { %v291_v29 = vmul.f32 %v285_v27, %v174_v22  ;;  %v295_v30 = vmul.f32 %v285_v27, %v172_v7  ;;  %554 = vmatprep.mubr.f32.mxu0 %v298_v25  ;;  %589 = vmatprep.mubr.f32.mxu1 %v292_v24 }
 0x191   :  { %v293_v31 = vsub.f32 %v289_v26, %v291_v29  ;;  %v299_v32 = vadd.f32 %v297_v28, %v295_v30 }
 0x193   :  { %555 = vmatmul.mubr.f32.vlgmr.msra.gmra.mxu0 %v299_v32  ;;  %590 = vmatmul.mubr.f32.vlgmr.msra.gmra.mxu1 %v293_v31 }
 0x253   :  { %v556_v33 = vpop.f32.mrf.mxu0  ;;  %v591_v34 = vpop.f32.mrf.mxu1 }
 0x254   :  { %v463_v35 = vadd.f32 %v591_v34, %v556_v33 }
 0x255   :  { %v382_v36 = vpop.f32.mrf.mxu0  ;;  %v457_v37 = vpop.f32.mrf.mxu1 }
 0x256   :  { %467 = vst [vmem:[#allocation8 + $0x8] sm:$0xff] %v463_v35  ;;  %v458_v38 = vadd.f32 %v457_v37, %v382_v36 }
 0x258   :  { %466 = vst [vmem:[#allocation8] sm:$0xff] %v458_v38 }
 0x259   :  { %676 = shalt.err (!%p673_p5)
}
 0x25a   :  { %479 = dma.vmem_to_hbm [thread:$0]  %s474_s2, 256, %s903_s3, [#allocation4], %s695_s22, %s695_s22, %s696_s23  }
 0x25b   :  { %689 = dma.done.wait [#allocation4], 256  }
 0x25c   :  { %690 = vsyncadd [#allocation4], 4294967040 }
 0x25d   :  { %483 = vsyncpa [#allocation3], 1 }
 0x25e   :  { %484 = vsyncpa [#allocation6], 1 }
 0x25f   :  { %485 = vsyncpa [#allocation4], 1 }

</bundles_post_ra>
